<compile_context>
chip_gen: v7x
topology: tpu7x:2x2x1
jax: 0.10.0
libtpu: 0.0.40
codegen_flags: <defaults>
</compile_context>

<pallas_src>
import jax
import jax.numpy as jnp
from jax.experimental import pallas as pl
from jax.experimental.pallas import tpu as pltpu

GAUSS_MU = 0.0
GAUSS_SIGMA = 1.0


def _gaussian(x):
    # exp(-(x - mu)^2 / (2 sigma^2)) -- VPU square/scale + EUP exp.
    return jnp.exp(-((x - GAUSS_MU) ** 2) / (2.0 * GAUSS_SIGMA ** 2))


def cppn_mlp_kernel(x_ref,
                    w1_ref, b1_ref,
                    w2_ref, b2_ref,
                    w3_ref, b3_ref,
                    w4_ref, b4_ref,
                    o_ref):
    """Fused 4x(Linear + Gaussian) on one lane-dense column tile.

    x_ref:  (input_dim, tile_m)   -- samples on the lane axis.
    w*_ref: (out, in) weights; b*_ref: (out, 1) biases (broadcast over lanes).
    o_ref:  (out_dim, tile_m)     -- lane-dense output slab.
    """
    h = x_ref[...].astype(jnp.float32)
    h = _gaussian(jnp.dot(w1_ref[...], h, preferred_element_type=jnp.float32)
                  + b1_ref[...])
    h = _gaussian(jnp.dot(w2_ref[...], h, preferred_element_type=jnp.float32)
                  + b2_ref[...])
    h = _gaussian(jnp.dot(w3_ref[...], h, preferred_element_type=jnp.float32)
                  + b3_ref[...])
    h = _gaussian(jnp.dot(w4_ref[...], h, preferred_element_type=jnp.float32)
                  + b4_ref[...])
    o_ref[...] = h.astype(o_ref.dtype)


def _round_up(a, b):
    return ((a + b - 1) // b) * b


def cppn_forward(x, params, *, tile_m=2048):
    """Apply the CPPN MLP along the last axis of x.

    x: (..., input_dim) float32
    params: dict with w1..w4 stored as (out, in) and b1..b4 as (out, 1),
            all float32 (torch.nn.Linear storage convention, bias kept 2-D).
    returns: (..., out_dim) float32
    """
    *lead, input_dim = x.shape
    hidden = params["w1"].shape[0]
    out_dim = params["w4"].shape[0]

    m = 1
    for d in lead:
        m *= d

    # Lane-dense layout: rows -> lane axis.  Single wrapper-side transpose
    # (layout plumbing); no jnp.pad of the input.
    x_t = jnp.transpose(x.reshape(m, input_dim))          # (input_dim, m)

    if m <= 128:
        tile = m                                          # full-extent block
    else:
        # Keep at least 2 grid steps so the "parallel" axis can shard across
        # v7x's two TensorCores; otherwise use the requested lane-aligned tile.
        max_tile = _round_up(pl.cdiv(m, 2), 128)
        tile = max(128, min(_round_up(tile_m, 128), max_tile))
    grid = (pl.cdiv(m, tile),)

    def full_spec(shape):
        return pl.BlockSpec(shape, lambda i: (0, 0))

    out_t = pl.pallas_call(
        cppn_mlp_kernel,
        out_shape=jax.ShapeDtypeStruct((out_dim, m), jnp.float32),
        grid=grid,
        in_specs=[
            pl.BlockSpec((input_dim, tile), lambda i: (0, i)),
            full_spec((hidden, input_dim)), full_spec((hidden, 1)),
            full_spec((hidden, hidden)), full_spec((hidden, 1)),
            full_spec((hidden, hidden)), full_spec((hidden, 1)),
            full_spec((out_dim, hidden)), full_spec((out_dim, 1)),
        ],
        out_specs=pl.BlockSpec((out_dim, tile), lambda i: (0, i)),
        compiler_params=pltpu.CompilerParams(
            dimension_semantics=("parallel",),
            # Tiny working set; explicit limit keeps v5e (16 MiB scoped default)
            # happy at large tiles and stays within v7x's 64 MiB physical VMEM.
            vmem_limit_bytes=32 * 1024 * 1024),
    )(x_t,
      params["w1"], params["b1"],
      params["w2"], params["b2"],
      params["w3"], params["b3"],
      params["w4"], params["b4"])

    out2d = jnp.transpose(out_t)                          # (m, out_dim)
    return out2d.reshape(*lead, out_dim)


def init_cppn_params(key, input_dim, hidden_dim, out_dim):
    """Deterministic nn.Linear-style init: U(-1/sqrt(fan_in), 1/sqrt(fan_in)).

    Weights stored as (out, in); biases as (out, 1).
    """
    dims = [(hidden_dim, input_dim),
            (hidden_dim, hidden_dim),
            (hidden_dim, hidden_dim),
            (out_dim, hidden_dim)]
    params = {}
    for idx, (fan_out, fan_in) in enumerate(dims, start=1):
        key, kw, kb = jax.random.split(key, 3)
        bound = 1.0 / (fan_in ** 0.5)
        params[f"w{idx}"] = jax.random.uniform(
            kw, (fan_out, fan_in), jnp.float32, -bound, bound)
        params[f"b{idx}"] = jax.random.uniform(
            kb, (fan_out, 1), jnp.float32, -bound, bound)
    return params


def cppn_forward_ref(x, params):
    """Pure-JAX reference (feature axis last, PyTorch Linear semantics)."""
    h = x
    for idx in range(1, 5):
        w = params[f"w{idx}"]
        b = params[f"b{idx}"]
        h = _gaussian(h @ w.T + b.reshape(1, -1))
    return h


if __name__ == "__main__":
    # CPPN defaults: external_channels=1 -> input_dim = 16, hidden_dim = 16,
    # output dim = external_channels.  The caller (get_action) feeds
    # grid.transpose(1, 3): layout (batch, W, H, feature).  Small grid_dim=16.
    external_channels = 1
    hidden_dim = 16
    grid_dim = 16
    input_dim = 16 * external_channels

    key = jax.random.PRNGKey(0)
    key, kx = jax.random.split(key)
    x = jax.random.normal(kx, (1, grid_dim, grid_dim, input_dim), jnp.float32)

    params = init_cppn_params(key, input_dim, hidden_dim, external_channels)

    out = cppn_forward(x, params)
    out = jax.block_until_ready(out)

    ref = cppn_forward_ref(x, params)
    assert out.shape == (1, grid_dim, grid_dim, external_channels)
    assert jnp.allclose(out, ref, atol=1e-5, rtol=1e-5), "mismatch vs reference"

    print("KERNEL_OK")
</pallas_src>

<mosaic_0001>
module attributes {stable_mosaic.version = 11 : i64} {
  func.func @cppn_mlp_kernel(%arg0: i32, %arg1: memref<16x128xf32, #tpu.memory_space<vmem>>, %arg2: memref<16x16xf32, #tpu.memory_space<vmem>>, %arg3: memref<16x1xf32, #tpu.memory_space<vmem>>, %arg4: memref<16x16xf32, #tpu.memory_space<vmem>>, %arg5: memref<16x1xf32, #tpu.memory_space<vmem>>, %arg6: memref<16x16xf32, #tpu.memory_space<vmem>>, %arg7: memref<16x1xf32, #tpu.memory_space<vmem>>, %arg8: memref<1x16xf32, #tpu.memory_space<vmem>>, %arg9: memref<1x1xf32, #tpu.memory_space<vmem>>, %arg10: memref<1x128xf32, #tpu.memory_space<vmem>>) attributes {dimension_semantics = [#tpu.dimension_semantics<parallel>], iteration_bounds = array<i64: 2>, scalar_prefetch = 0 : i64, scratch_operands = 0 : i64, tpu.core_type = #tpu.core_type<tc>, window_params = [{transform_indices = @transform_0, window_bounds = array<i64: 16, 128>}, {pipeline_mode = #tpu.pipeline_mode<synchronous>, transform_indices = @transform_1, window_bounds = array<i64: 16, 16>}, {pipeline_mode = #tpu.pipeline_mode<synchronous>, transform_indices = @transform_2, window_bounds = array<i64: 16, 1>}, {pipeline_mode = #tpu.pipeline_mode<synchronous>, transform_indices = @transform_3, window_bounds = array<i64: 16, 16>}, {pipeline_mode = #tpu.pipeline_mode<synchronous>, transform_indices = @transform_4, window_bounds = array<i64: 16, 1>}, {pipeline_mode = #tpu.pipeline_mode<synchronous>, transform_indices = @transform_5, window_bounds = array<i64: 16, 16>}, {pipeline_mode = #tpu.pipeline_mode<synchronous>, transform_indices = @transform_6, window_bounds = array<i64: 16, 1>}, {pipeline_mode = #tpu.pipeline_mode<synchronous>, transform_indices = @transform_7, window_bounds = array<i64: 1, 16>}, {pipeline_mode = #tpu.pipeline_mode<synchronous>, transform_indices = @transform_8, window_bounds = array<i64: 1, 1>}, {transform_indices = @transform_9, window_bounds = array<i64: 1, 128>}]} {
    %c0 = arith.constant 0 : index
    %c0_0 = arith.constant 0 : index
    %0 = vector.load %arg1[%c0, %c0_0] : memref<16x128xf32, #tpu.memory_space<vmem>>, vector<16x128xf32>
    %c0_1 = arith.constant 0 : index
    %c0_2 = arith.constant 0 : index
    %1 = vector.load %arg2[%c0_1, %c0_2] : memref<16x16xf32, #tpu.memory_space<vmem>>, vector<16x16xf32>
    %cst = arith.constant dense<0.000000e+00> : vector<16x128xf32>
    %2 = tpu.matmul %1, %0, %cst {dimension_numbers = #tpu.dot_dimension_numbers<[1], [0], [0], [1], [0, 0, 1, 1], [], []>} : vector<16x16xf32>, vector<16x128xf32>, vector<16x128xf32> -> vector<16x128xf32>
    %c0_3 = arith.constant 0 : index
    %c0_4 = arith.constant 0 : index
    %3 = vector.load %arg3[%c0_3, %c0_4] : memref<16x1xf32, #tpu.memory_space<vmem>>, vector<16x1xf32>
    %4 = vector.broadcast %3 : vector<16x1xf32> to vector<16x128xf32>
    %5 = arith.addf %2, %4 : vector<16x128xf32>
    %cst_5 = arith.constant 0.000000e+00 : f32
    %6 = vector.broadcast %cst_5 : f32 to vector<16x128xf32>
    %7 = arith.subf %5, %6 : vector<16x128xf32>
    %8 = arith.mulf %7, %7 : vector<16x128xf32>
    %cst_6 = arith.constant 0.000000e+00 : f32
    %9 = vector.broadcast %cst_6 : f32 to vector<16x128xf32>
    %10 = arith.subf %9, %8 : vector<16x128xf32>
    %cst_7 = arith.constant 2.000000e+00 : f32
    %11 = vector.broadcast %cst_7 : f32 to vector<16x128xf32>
    %12 = arith.divf %10, %11 : vector<16x128xf32>
    %13 = math.exp %12 : vector<16x128xf32>
    %c0_8 = arith.constant 0 : index
    %c0_9 = arith.constant 0 : index
    %14 = vector.load %arg4[%c0_8, %c0_9] : memref<16x16xf32, #tpu.memory_space<vmem>>, vector<16x16xf32>
    %cst_10 = arith.constant dense<0.000000e+00> : vector<16x128xf32>
    %15 = tpu.matmul %14, %13, %cst_10 {dimension_numbers = #tpu.dot_dimension_numbers<[1], [0], [0], [1], [0, 0, 1, 1], [], []>} : vector<16x16xf32>, vector<16x128xf32>, vector<16x128xf32> -> vector<16x128xf32>
    %c0_11 = arith.constant 0 : index
    %c0_12 = arith.constant 0 : index
    %16 = vector.load %arg5[%c0_11, %c0_12] : memref<16x1xf32, #tpu.memory_space<vmem>>, vector<16x1xf32>
    %17 = vector.broadcast %16 : vector<16x1xf32> to vector<16x128xf32>
    %18 = arith.addf %15, %17 : vector<16x128xf32>
    %cst_13 = arith.constant 0.000000e+00 : f32
    %19 = vector.broadcast %cst_13 : f32 to vector<16x128xf32>
    %20 = arith.subf %18, %19 : vector<16x128xf32>
    %21 = arith.mulf %20, %20 : vector<16x128xf32>
    %cst_14 = arith.constant 0.000000e+00 : f32
    %22 = vector.broadcast %cst_14 : f32 to vector<16x128xf32>
    %23 = arith.subf %22, %21 : vector<16x128xf32>
    %cst_15 = arith.constant 2.000000e+00 : f32
    %24 = vector.broadcast %cst_15 : f32 to vector<16x128xf32>
    %25 = arith.divf %23, %24 : vector<16x128xf32>
    %26 = math.exp %25 : vector<16x128xf32>
    %c0_16 = arith.constant 0 : index
    %c0_17 = arith.constant 0 : index
    %27 = vector.load %arg6[%c0_16, %c0_17] : memref<16x16xf32, #tpu.memory_space<vmem>>, vector<16x16xf32>
    %cst_18 = arith.constant dense<0.000000e+00> : vector<16x128xf32>
    %28 = tpu.matmul %27, %26, %cst_18 {dimension_numbers = #tpu.dot_dimension_numbers<[1], [0], [0], [1], [0, 0, 1, 1], [], []>} : vector<16x16xf32>, vector<16x128xf32>, vector<16x128xf32> -> vector<16x128xf32>
    %c0_19 = arith.constant 0 : index
    %c0_20 = arith.constant 0 : index
    %29 = vector.load %arg7[%c0_19, %c0_20] : memref<16x1xf32, #tpu.memory_space<vmem>>, vector<16x1xf32>
    %30 = vector.broadcast %29 : vector<16x1xf32> to vector<16x128xf32>
    %31 = arith.addf %28, %30 : vector<16x128xf32>
    %cst_21 = arith.constant 0.000000e+00 : f32
    %32 = vector.broadcast %cst_21 : f32 to vector<16x128xf32>
    %33 = arith.subf %31, %32 : vector<16x128xf32>
    %34 = arith.mulf %33, %33 : vector<16x128xf32>
    %cst_22 = arith.constant 0.000000e+00 : f32
    %35 = vector.broadcast %cst_22 : f32 to vector<16x128xf32>
    %36 = arith.subf %35, %34 : vector<16x128xf32>
    %cst_23 = arith.constant 2.000000e+00 : f32
    %37 = vector.broadcast %cst_23 : f32 to vector<16x128xf32>
    %38 = arith.divf %36, %37 : vector<16x128xf32>
    %39 = math.exp %38 : vector<16x128xf32>
    %c0_24 = arith.constant 0 : index
    %c0_25 = arith.constant 0 : index
    %40 = vector.load %arg8[%c0_24, %c0_25] : memref<1x16xf32, #tpu.memory_space<vmem>>, vector<1x16xf32>
    %cst_26 = arith.constant dense<0.000000e+00> : vector<1x128xf32>
    %41 = tpu.matmul %40, %39, %cst_26 {dimension_numbers = #tpu.dot_dimension_numbers<[1], [0], [0], [1], [0, 0, 1, 1], [], []>} : vector<1x16xf32>, vector<16x128xf32>, vector<1x128xf32> -> vector<1x128xf32>
    %c0_27 = arith.constant 0 : index
    %c0_28 = arith.constant 0 : index
    %42 = vector.load %arg9[%c0_27, %c0_28] : memref<1x1xf32, #tpu.memory_space<vmem>>, vector<1x1xf32>
    %43 = vector.broadcast %42 : vector<1x1xf32> to vector<1x128xf32>
    %44 = arith.addf %41, %43 : vector<1x128xf32>
    %cst_29 = arith.constant 0.000000e+00 : f32
    %45 = vector.broadcast %cst_29 : f32 to vector<1x128xf32>
    %46 = arith.subf %44, %45 : vector<1x128xf32>
    %47 = arith.mulf %46, %46 : vector<1x128xf32>
    %cst_30 = arith.constant 0.000000e+00 : f32
    %48 = vector.broadcast %cst_30 : f32 to vector<1x128xf32>
    %49 = arith.subf %48, %47 : vector<1x128xf32>
    %cst_31 = arith.constant 2.000000e+00 : f32
    %50 = vector.broadcast %cst_31 : f32 to vector<1x128xf32>
    %51 = arith.divf %49, %50 : vector<1x128xf32>
    %52 = math.exp %51 : vector<1x128xf32>
    %c0_32 = arith.constant 0 : index
    %c0_33 = arith.constant 0 : index
    %53 = vector.load %arg10[%c0_32, %c0_33] : memref<1x128xf32, #tpu.memory_space<vmem>>, vector<1x128xf32>
    tpu.vector_store %arg10[%c0_32, %c0_33], %52 {strides = array<i32>} : memref<1x128xf32, #tpu.memory_space<vmem>>, vector<1x128xf32>,
    return
  }
  func.func @transform_0(%arg0: i32) -> (i32, i32) {
    %c0_i32 = arith.constant 0 : i32
    %c0_i32_0 = arith.constant 0 : i32
    return %c0_i32, %arg0 : i32, i32
  }
  func.func @transform_1(%arg0: i32) -> (i32, i32) {
    %c0_i32 = arith.constant 0 : i32
    %c0_i32_0 = arith.constant 0 : i32
    %c0_i32_1 = arith.constant 0 : i32
    return %c0_i32, %c0_i32_0 : i32, i32
  }
  func.func @transform_2(%arg0: i32) -> (i32, i32) {
    %c0_i32 = arith.constant 0 : i32
    %c0_i32_0 = arith.constant 0 : i32
    %c0_i32_1 = arith.constant 0 : i32
    return %c0_i32, %c0_i32_0 : i32, i32
  }
  func.func @transform_3(%arg0: i32) -> (i32, i32) {
    %c0_i32 = arith.constant 0 : i32
    %c0_i32_0 = arith.constant 0 : i32
    %c0_i32_1 = arith.constant 0 : i32
    return %c0_i32, %c0_i32_0 : i32, i32
  }
  func.func @transform_4(%arg0: i32) -> (i32, i32) {
    %c0_i32 = arith.constant 0 : i32
    %c0_i32_0 = arith.constant 0 : i32
    %c0_i32_1 = arith.constant 0 : i32
    return %c0_i32, %c0_i32_0 : i32, i32
  }
  func.func @transform_5(%arg0: i32) -> (i32, i32) {
    %c0_i32 = arith.constant 0 : i32
    %c0_i32_0 = arith.constant 0 : i32
    %c0_i32_1 = arith.constant 0 : i32
    return %c0_i32, %c0_i32_0 : i32, i32
  }
  func.func @transform_6(%arg0: i32) -> (i32, i32) {
    %c0_i32 = arith.constant 0 : i32
    %c0_i32_0 = arith.constant 0 : i32
    %c0_i32_1 = arith.constant 0 : i32
    return %c0_i32, %c0_i32_0 : i32, i32
  }
  func.func @transform_7(%arg0: i32) -> (i32, i32) {
    %c0_i32 = arith.constant 0 : i32
    %c0_i32_0 = arith.constant 0 : i32
    %c0_i32_1 = arith.constant 0 : i32
    return %c0_i32, %c0_i32_0 : i32, i32
  }
  func.func @transform_8(%arg0: i32) -> (i32, i32) {
    %c0_i32 = arith.constant 0 : i32
    %c0_i32_0 = arith.constant 0 : i32
    %c0_i32_1 = arith.constant 0 : i32
    return %c0_i32, %c0_i32_0 : i32, i32
  }
  func.func @transform_9(%arg0: i32) -> (i32, i32) {
    %c0_i32 = arith.constant 0 : i32
    %c0_i32_0 = arith.constant 0 : i32
    return %c0_i32, %arg0 : i32, i32
  }
}

</mosaic_0001>

<bundles_post_ra>
// kernel: tpu_custom_call.1
= control target key start
LH: loop header
LB: loop body
LE: loop exit
PB: predicated region body
PF: predicated region fallthrough
CT: control target
= control target key end

     0   :  { %s1377_s0 = inlined_call_operand.vmem [shape: f32[16,256], index: 0, kind: input, shape index: {}]   ;;  %s1378_s1 = inlined_call_operand.vmem [shape: f32[16,16], index: 1, kind: input, shape index: {}]   ;;  %s1379_s2 = inlined_call_operand.vmem [shape: f32[16,1], index: 2, kind: input, shape index: {}]   ;;  %s1380_s3 = inlined_call_operand.vmem [shape: f32[16,16], index: 3, kind: input, shape index: {}]   ;;  %s1381_s4 = inlined_call_operand.vmem [shape: f32[16,1], index: 4, kind: input, shape index: {}]   ;;  %s1382_s5 = inlined_call_operand.hbm [shape: f32[16,16], index: 5, kind: input, shape index: {}]   ;;  %s1383_s6 = inlined_call_operand.vmem [shape: f32[16,1], index: 6, kind: input, shape index: {}]   ;;  %s1384_s7 = inlined_call_operand.vmem [shape: f32[1,16], index: 7, kind: input, shape index: {}]   ;;  %s1385_s8 = inlined_call_operand.<no memory space> [shape: f32[1,1], index: 8, kind: input, shape index: {}]   ;;  %s1386_s9 = inlined_call_operand.hbm [shape: f32[1,256], index: 9, kind: output, shape index: {}]  }
   0x1   :  { %v14_v0 = vstv %s1385_s8 }
   0x2   :  { %15 = vst [vmem:[#allocation2] sm:$0x1] %v14_v0 }
   0x3   :  { %16 = vsyncpa [#allocation5], 0 }
   0x4   :  { %17 = vsyncpa [#allocation6], 0 }
   0x5   :  { %19 = vsyncpa [#allocation6 + $0x1], 0  ;;  %s1186_s11 = smov 0   ;;  %s1188_s12 = smov 0  }
   0x6   :  { %s1190_s13 = smov 0   ;;  %s1192_s14 = smov 0  }
   0x7 LB: > { %s1207_s8 = sadd.s32 4294967295, %s1123_s14   ;;  %s880_s15 = sadd.s32 4294967294, %s1123_s14   ;;  %s1123_s14 = sphi %s1192_s14, %s1404_s14   ;;  %s1119_s13 = sphi %s1190_s13, %s1403_s13   ;;  %s1115_s12 = sphi %s1188_s12, %s1402_s12   ;;  %s1111_s11 = sphi %s1186_s11, %s1401_s11  }
   0x8   : > { %s1211_s16 = sadd.s32 1, %s1123_s14   ;;  %s32_s17 = sadd.s32 1, %s1119_s13 }
   0x9   : > { %s29_s18 = ssub.s32 %s1123_s14, %s1211_s16  ;;  %p39_p0 = scmp.ne.s32.totalorder %s1119_s13, %s1115_s12 }
   0xa   : > { %p30_p1 = scmp.eq.s32.totalorder %s29_s18, 0  ;;  %p40_p2 = scmp.eq.s32.totalorder %s1123_s14, 0 }
   0xb   : > { %p237_p3 = scmp.eq.s32.totalorder %s1207_s8, 1  ;;  %p242_p4 = scmp.ne.s32.totalorder %s1115_s12, %s1111_s11 }
   0xc   : > { %s1223_s19 = scalar_select %p30_p1, %s1119_s13, %s32_s17  }
   0xd   : > { %p1225_p5 = por %p40_p2, %p39_p0  ;;  %p1229_p6 = por %p237_p3, %p39_p0 }
   0xe   : > { %p243_p7 = scmp.eq.s32.totalorder %s880_s15, 1  ;;  %p881_p8 = scmp.ge.s32.totalorder %s1123_s14, 1 }
   0xf   : > { %s1390_s20 = scalar_select %p1225_p5, 1, 0 }
  0x10   : > { %s1391_s21 = scalar_select %p1229_p6, 1, 0 }
  0x11   : > { %p250_p9 = scmp.lt.s32.totalorder %s1123_s14, 3  ;;  %p1235_p10 = por %p243_p7, %p242_p4 }
  0x12   : > { %p1387_p11 = scmp.eq.s32.totalorder %s1207_s8, 0  ;;  %s1125_s24 = smov [#allocation4]  }
  0x13   : > { %s1392_s22 = scalar_select %p1235_p10, 1, 0 }
  0x14   : > { %p1240_p12 = pnand %p881_p8, %p250_p9  ;;  %s274_s25 = sshll.u32 %s1125_s24, 4  ;;  %s275_s25 = int_to_ptr.vmem [resolvable:$true] %s274_s25 }
  0x15   : > { %s1029_s29 = scalar_lea.hbm %s1382_s5, 256 }
  0x16   : > { %s1393_s23 = scalar_select %p1240_p12, 1, 0 }
  0x17   : > { %p963_p13 = pneg %p1240_p12  ;;  %p1030_p1 = scmp.ne.s32.totalorder %s1382_s5, %s1029_s29 }
  0x18   : > { %p1036_p7 = scmp.lt.u32.totalorder %s1029_s29, %s1382_s5 }
  0x19   : > { %p1248_p0 = pnand %p1387_p11, %p963_p13 }
  0x1b   : > { %p1031_p2 = pneg %p1248_p0 }
  0x1d   : > { %p1032_p3 = pnand %p1031_p2, %p1030_p1 }
  0x1f   : > { %p1033_p4 = pneg %p1032_p3 }
  0x21   : > { %p1038_p8 = pnand %p1036_p7, %p1033_p4 }
  0x23   : > { %1041 = shalt.err (!%p1038_p8)
}
  0x24   : > { %s1042_s18 = scalar_lea.vmem %s275_s25, 256  ;;  %p1050_p10 = scmp.lt.s32.totalorder %s275_s25, %s275_s25 }
  0x25   : > { %p1043_p9 = scmp.ne.s32.totalorder %s275_s25, %s1042_s18  ;;  %p1051_p6 = scmp.lt.s32.totalorder %s1042_s18, %s1042_s18 }
  0x27   : > { %p1045_p13 = pnand %p1043_p9, %p1031_p2  ;;  %p1052_p12 = por %p1051_p6, %p1050_p10 }
  0x29   : > { %p1046_p11 = pneg %p1045_p13 }
  0x2b   : > { %p1053_p5 = pnand %p1052_p12, %p1046_p11 }
  0x2d   : > { %1056 = shalt.err (!%p1053_p5)
}
  0x2e   : > { %s1126_s24 = smov 128   ;;  %s1127_s27 = smov 8  }
  0x2f   : > { %966 = dma.hbm_to_vmem [thread:$0]  (!%p1248_p0), %s1382_s5, 256, %s275_s25, [#allocation5], %s1126_s24, %s1126_s24, %s1127_s27  }
  0x30   : > { %p883_p1 = scmp.ge.s32.totalorder %s1123_s14, 2 }
  0x31   : > { %p1395_p2 = scmp.ne.s32.totalorder (!%p883_p1), %s1390_s20, 0 }
  0x32   : > { %293 = sbr.rel (%p883_p1) target bundleno = 64 (0x40), region = 48 }
  0x39   : > { %296 = sbr.rel (!%p1395_p2) target bundleno = 64 (0x40), region = 52  ;;  %s298_s29 = sand.u32 (%p1395_p2), 1, %s1119_s13  }
  0x3a   : > { %s885_s10 = sshll.u32 (%p1395_p2), %s1123_s14, 3  ;;  %s884_s15 = sshll.u32 (%p1395_p2), %s298_s29, 4 }
  0x3b   : > { %s302_s26 = scalar_lea.vmem (%p1395_p2), %s1377_s0, %s885_s10  ;;  %s300_s25 = scalar_lea.vmem (%p1395_p2), [#allocation3], %s884_s15 }
  0x3c   : > { %v332_v1 = vld [vmem:[%s302_s26] sm:$0xff] (%p1395_p2)  ;;  %v334_v2 = vld [vmem:[%s302_s26 + $0x10] sm:$0xff] (%p1395_p2) }
  0x3d   : > { %333 = vst [vmem:[%s300_s25] sm:$0xff] (%p1395_p2), %v332_v1  ;;  %335 = vst [vmem:[%s300_s25 + $0x8] sm:$0xff] (%p1395_p2), %v334_v2 }
  0x40 PF: > { %p1396_p5 = scmp.ne.s32.totalorder %s1393_s23, 0 }
  0x41   : > { %s1281_s20 = sand.u32 (!%p1396_p5), 1, %s1115_s12   ;;  %p1397_p6 = scmp.eq.s32.totalorder (!%p1396_p5), %s1207_s8, 0 }
  0x42   : > { %344 = sbr.rel (%p1396_p5) target bundleno = 1047 (0x417), region = 90  ;;  %s887_s24 = sshll.u32 (!%p1396_p5), %s1281_s20, 4 }
  0x43   : > { %s349_s27 = scalar_lea.vmem (!%p1396_p5), [#allocation3], %s887_s24 }
  0x49   : > { %1102 = dma.done.wait (%p1397_p6), [#allocation5], 256   ;;  %p1398_p10 = pmov %p1397_p6 }
  0x4a   : > { %v1128_v3 = vmov 0   ;;  %vm401_vm0 = vcmask 130048   ;;  %v385_v4 = vld [vmem:[%s349_s27] sm:$0xff]  ;;  %v386_v5 = vld [vmem:[%s349_s27 + $0x8] sm:$0xff]  ;;  %v1129_v54 = vmov 0.0|0.0   ;;  %vm1130_vm1 = vmmov 0  }
  0x4b   : > { %1104 = vsyncadd (%p1398_p10), [#allocation5], 4294967040  ;;  %1013 = vset.pattern.permute.xlu0 %v1128_v3  ;;  %1014 = vset.pattern.permute.xlu1 %v1128_v3  ;;  %v387_v6 = vld [vmem:[%s1378_s1] sm:$0xff]  ;;  %v942_v7 = vpack.c.bf16 %v386_v5, %v385_v4  ;;  %v390_v9 = vld [vmem:[%s1379_s2 + $0x8] sm:$0xff]  ;;  %v1131_v55 = vmov 0.0   ;;  %s896_s24 = sshll.u32 %s1207_s8, 4 }
  0x4c   : > { %918 = vmatprep.mubr.msk.f32.mxu0 %vm401_vm0, %v387_v6  ;;  %v389_v8 = vld [vmem:[%s1379_s2] sm:$0xff]  ;;  %v388_v10 = vld [vmem:[%s1378_s1 + $0x8] sm:$0xff]  ;;  %s384_s27 = scalar_lea.vmem [#allocation7], %s1281_s20  ;;  %s1333_s29 = scalar_lea.hbm %s1386_s9, %s896_s24 }
  0x4d   : > { %393 = vperm.xlu0 %1013, %v389_v8   ;;  %943 = vmatprep.subr.bf16.mxu0 %v942_v7  ;;  %v601_v11 = vld [vmem:[%s1383_s6] sm:$0xff]  ;;  %v497_v15 = vld [vmem:[%s1381_s4 + $0x8] sm:$0xff]  ;;  %s807_s23 = sshll.u32 %s384_s27, 4  ;;  %s795_s10 = scalar_lea.sflag [#allocation6], %s1281_s20  ;;  %s1335_s23 = int_to_ptr.vmem [resolvable:$true] %s807_s23 }
  0x4e   : > { %945 = vmatpush3.bf16.msra.mxu0 %v942_v7  ;;  %v705_v12 = vld [vmem:[#allocation2] sm:$0x1]  ;;  %v602_v16 = vld [vmem:[%s1383_s6 + $0x8] sm:$0xff]  ;;  %s1057_s15 = scalar_lea.vmem %s1335_s23, 16  ;;  %p1399_p12 = scmp.ne.s32.totalorder %s1391_s21, 0 }
  0x4f   : > { %v494_v13 = vld [vmem:[%s1380_s3] sm:$0xff]  ;;  %v495_v34 = vld [vmem:[%s1380_s3 + $0x8] sm:$0xff]  ;;  %p1058_p11 = scmp.ne.s32.totalorder %s1335_s23, %s1057_s15  ;;  %s1132_s8 = smov [#allocation7]  }
  0x50   : > { %925 = vmatprep.mubr.msk.f32.mxu1 %vm401_vm0, %v494_v13  ;;  %v496_v14 = vld [vmem:[%s1381_s4] sm:$0xff]  ;;  %v600_v53 = vld [vmem:[#allocation4 + $0x8] sm:$0xff]  ;;  %s1061_s17 = sshll.u32 %s1132_s8, 4  ;;  %s1062_s17 = int_to_ptr.vmem [resolvable:$false] %s1061_s17 }
  0x51   : > { %398 = vperm.xlu0 %1013, %v390_v9   ;;  %919 = vmatmul.mubr.msk.f32.vlgmr.msra.gmra.mrb[0].mxu0 %vm401_vm0, %v388_v10  ;;  %v599_v35 = vld [vmem:[#allocation4] sm:$0xff]  ;;  %v704_v9 = vld [vmem:[%s1384_s7] sm:$0x1]  ;;  %v711_v10 = vlaneseq  ;;  %p1059_p0 = pnand %p1058_p11, %p1399_p12  ;;  %s1063_s18 = scalar_lea.vmem %s1062_s17, 32 }
  0x52   : > { %500 = vperm.xlu1 %1014, %v496_v14   ;;  %932 = vmatprep.mubr.msk.f32.mxu0 %vm401_vm0, %v599_v35  ;;  %p1064_p4 = scmp.lt.s32.totalorder %s1335_s23, %s1062_s17  ;;  %p1065_p7 = scmp.lt.s32.totalorder %s1063_s18, %s1057_s15 }
  0x53   : > { %p1060_p3 = pneg %p1059_p0 }
  0x54   : > { %p1066_p8 = por %p1065_p7, %p1064_p4 }
  0x55   : > { %605 = vperm.xlu0 %1013, %v601_v11   ;;  %v712_v11 = vshrl.u32 %v711_v10, 7 }
  0x56   : > { %505 = vperm.xlu1 %1014, %v497_v15   ;;  %p1067_p9 = pnand %p1066_p8, %p1060_p3 }
  0x59   : > { %708 = vperm.xlu0 %1013, %v705_v12   ;;  %v713_v12 = vsub.s32 0, %v712_v11 }
  0x5a   : > { %610 = vperm.xlu1 %1014, %v602_v16  }
  0xcc   : > { %v394_v17 = vpop.permute.xlu0 %393 }
  0xd0   : > { %v399_v18 = vpop.permute.xlu0 %398 }
  0xd1   : > { %v501_v36 = vpop.permute.xlu1 %500 }
  0xd4   : > { %v606_v58 = vpop.permute.xlu0 %605 }
  0xd5   : > { %v506_v37 = vpop.permute.xlu1 %505 }
  0xd8   : > { %v709_v13 = vpop.permute.xlu0 %708 }
  0xd9   : > { %v611_v56 = vpop.permute.xlu1 %610  ;;  %v714_v14 = vrot.slane %v709_v13, %v713_v12 }
 0x124   : > { %v920_v19 = vpop.f32.mrb[0].mxu0 }
 0x125   : > { %v480_v20 = vadd.f32 %v920_v19, %v399_v18  ;;  %v474_v21 = vpop.f32.mrb[1].mxu0 }
 0x126   : > { %v475_v22 = vadd.f32 %v474_v21, %v394_v17 }
 0x127   : > { %v484_v23 = vmul.f32 %v480_v20, %v480_v20 }
 0x128   : > { %v483_v24 = vmul.f32 %v475_v22, %v475_v22 }
 0x129   : > { %v486_v25 = vsub.f32 0.0, %v484_v23 }
 0x12a   : > { %v485_v26 = vsub.f32 0.0, %v483_v24 }
 0x12b   : > { %v489_v27 = vmul.f32 0.5, %v486_v25 }
 0x12c   : > { %v488_v28 = vmul.f32 0.5, %v485_v26 }
 0x12d   : > { %v492_v29 = vmul.f32 1.442695, %v489_v27 }
 0x12e   : > { %v490_v30 = vmul.f32 1.442695, %v488_v28 }
 0x12f   : > { %1015 = vpow2.f32 %v492_v29 }
 0x130   : > { %1017 = vpow2.f32 %v490_v30 }
 0x139   : > { %v1016_v31 = vpop.eup %1015 }
 0x13a   : > { %v1018_v32 = vpop.eup %1017 }
 0x13b   : > { %v946_v33 = vpack.c.bf16 %v1016_v31, %v1018_v32 }
 0x13d   : > { %947 = vmatprep.subr.bf16.mxu1 %v946_v33 }
 0x13e   : > { %949 = vmatpush3.bf16.msra.mxu1 %v946_v33 }
 0x13f   : > { %954 = vmatprep.subr.bf16.mxu1 %v1129_v54 }
 0x141   : > { %926 = vmatmul.mubr.msk.f32.vlgmr.msra.gmra.mrb[0].mxu1 %vm401_vm0, %v495_v34 }
 0x142   : > { %939 = vmatprep.mubr.msk.f32.mxu1 %vm1130_vm1, %v1131_v55 }
 0x214   : > { %v927_v38 = vpop.f32.mrb[0].mxu1 }
 0x215   : > { %v586_v39 = vadd.f32 %v927_v38, %v506_v37  ;;  %v580_v40 = vpop.f32.mrb[1].mxu1 }
 0x216   : > { %v581_v41 = vadd.f32 %v580_v40, %v501_v36 }
 0x217   : > { %v590_v42 = vmul.f32 %v586_v39, %v586_v39 }
 0x218   : > { %v589_v43 = vmul.f32 %v581_v41, %v581_v41 }
 0x219   : > { %v592_v44 = vsub.f32 0.0, %v590_v42 }
 0x21a   : > { %v591_v45 = vsub.f32 0.0, %v589_v43 }
 0x21b   : > { %v594_v46 = vmul.f32 0.5, %v592_v44 }
 0x21c   : > { %v593_v47 = vmul.f32 0.5, %v591_v45 }
 0x21d   : > { %v597_v48 = vmul.f32 1.442695, %v594_v46 }
 0x21e   : > { %v595_v49 = vmul.f32 1.442695, %v593_v47 }
 0x21f   : > { %1019 = vpow2.f32 %v597_v48 }
 0x220   : > { %1021 = vpow2.f32 %v595_v49 }
 0x229   : > { %v1020_v50 = vpop.eup %1019 }
 0x22a   : > { %v1022_v51 = vpop.eup %1021 }
 0x22b   : > { %v950_v52 = vpack.c.bf16 %v1020_v50, %v1022_v51 }
 0x22d   : > { %951 = vmatprep.subr.bf16.mxu0 %v950_v52 }
 0x22e   : > { %953 = vmatpush3.bf16.msra.mxu0 %v950_v52 }
 0x231   : > { %933 = vmatmul.mubr.msk.f32.vlgmr.msra.gmra.mrb[2].mxu0 %vm401_vm0, %v600_v53 }
 0x304   : > { %v934_v57 = vpop.f32.mrb[2].mxu0 }
 0x305   : > { %v691_v59 = vadd.f32 %v934_v57, %v611_v56  ;;  %v685_v60 = vpop.f32.mrb[3].mxu0 }
 0x306   : > { %v686_v61 = vadd.f32 %v685_v60, %v606_v58 }
 0x307   : > { %v695_v62 = vmul.f32 %v691_v59, %v691_v59 }
 0x308   : > { %v694_v63 = vmul.f32 %v686_v61, %v686_v61 }
 0x309   : > { %v697_v0 = vsub.f32 0.0, %v695_v62 }
 0x30a   : > { %v696_v1 = vsub.f32 0.0, %v694_v63 }
 0x30b   : > { %v699_v2 = vmul.f32 0.5, %v697_v0 }
 0x30c   : > { %v698_v3 = vmul.f32 0.5, %v696_v1 }
 0x30d   : > { %v702_v4 = vmul.f32 1.442695, %v699_v2 }
 0x30e   : > { %v700_v5 = vmul.f32 1.442695, %v698_v3 }
 0x30f   : > { %1023 = vpow2.f32 %v702_v4 }
 0x310   : > { %1025 = vpow2.f32 %v700_v5 }
 0x319   : > { %v1024_v6 = vpop.eup %1023 }
 0x31a   : > { %v1026_v7 = vpop.eup %1025 }
 0x31b   : > { %v955_v8 = vpack.c.bf16 %v1024_v6, %v1026_v7 }
 0x31d   : > { %956 = vmatpush3.bf16.msra.mxu1 %v955_v8 }
 0x320   : > { %940 = vmatmul.mubr.msk.f32.vlgmr.msra.gmra.mrb[2].mxu1 %vm401_vm0, %v704_v9 }
 0x3f3   : > { %v784_v15 = vpop.f32.mrb[2].mxu1 }
 0x3f4   : > { %v785_v16 = vadd.f32 %v784_v15, %v714_v14  ;;  %v941_v17 = vpop.f32.mrb[3].mxu1 }
 0x3f6   : > { %v788_v18 = vmul.f32 %v785_v16, %v785_v16 }
 0x3f8   : > { %v789_v19 = vsub.f32 0.0, %v788_v18 }
 0x3fa   : > { %v790_v20 = vmul.f32 0.5, %v789_v19 }
 0x3fc   : > { %v791_v21 = vmul.f32 1.442695, %v790_v20 }
 0x3fe   : > { %1027 = vpow2.f32 %v791_v21 }
 0x408   : > { %v1028_v22 = vpop.eup %1027 }
 0x409   : > { %793 = vst [vmem:[%s384_s27] sm:$0x1] %v1028_v22 }
 0x40a   : > { %1070 = shalt.err (!%p1067_p9)
}
 0x40b   : > { %s1071_s20 = scalar_lea.hbm %s1333_s29, 16  ;;  %s1075_s24 = scalar_lea.hbm %s1386_s9, 32 }
 0x40c   : > { %p1072_p13 = scmp.ne.s32.totalorder %s1333_s29, %s1071_s20  ;;  %p1076_p6 = scmp.lt.u32.totalorder %s1333_s29, %s1386_s9 }
 0x40d   : > { %p1077_p10 = scmp.lt.u32.totalorder %s1075_s24, %s1071_s20  ;;  %p1079_p0 = scmp.lt.u32.totalorder %s1071_s20, %s1333_s29 }
 0x40e   : > { %p1073_p2 = pnand %p1072_p13, %p1399_p12 }
 0x40f   : > { %p1078_p11 = por %p1077_p10, %p1076_p6 }
 0x410   : > { %p1074_p5 = pneg %p1073_p2 }
 0x411   : > { %p1080_p3 = por %p1079_p0, %p1078_p11 }
 0x413   : > { %p1081_p4 = pnand %p1080_p3, %p1074_p5 }
 0x415   : > { %1084 = shalt.err (!%p1081_p4)
}
 0x416   : > { %961 = dma.vmem_to_hbm [thread:$0]  (%p1399_p12), %s1335_s23, 16, %s1333_s29, %s795_s10  }
 0x417 PF: > { %s819_s30 = sand.u32 1, %s1111_s11   ;;  %p1400_p7 = scmp.ne.s32.totalorder %s1392_s22, 0 }
 0x418   : > { %s820_s15 = scalar_lea.sflag [#allocation6], %s819_s30 }
 0x419   : > { %p968_p8 = pnand %p883_p1, %p1400_p7 }
 0x41b   : > { %1106 = dma.done.wait (!%p968_p8), %s820_s15, 16  }
 0x41c   : > { %1108 = vsyncadd (!%p968_p8), %s820_s15, 4294967280  ;;  %p22_p9 = scmp.ge.s32.totalorder %s1211_s16, 4   ;;  %s1401_s11 = smov %s1115_s12 }
 0x41d   : > { %s1402_s12 = smov %s1119_s13  ;;  %s1403_s13 = smov %s1223_s19 }
 0x41e   : > { %s1404_s14 = smov %s1211_s16  ;;  %24 = sbr.rel (!%p22_p9) target bundleno = 7 (0x7), region = 139 }
 0x425   :  { %824 = vsyncpa [#allocation5], 1 }
 0x426   :  { %826 = vsyncpa [#allocation5 + $0x1], 1 }
 0x427   :  { %827 = vsyncpa [#allocation6], 1 }
 0x428   :  { %829 = vsyncpa [#allocation6 + $0x1], 1 }

</bundles_post_ra>
